<compile_context>
chip_gen: v5e
topology: v5e:2x2
jax: 0.10.0
libtpu: 0.0.40
codegen_flags: <defaults>
</compile_context>

<pallas_src>
import functools

import jax
import jax.numpy as jnp
from jax.experimental import pallas as pl
from jax.experimental.pallas import tpu as pltpu

ALPHA = 1.0
GAMMA = 2.0  # hard-coded as (1-pt)*(1-pt) below


def _focal_loss_kernel(logits_ref, tgt_ref, out_ref, *, n_valid, tile_n):
    i = pl.program_id(0)

    # zero the resident (1,1) accumulator on the first grid step
    @pl.when(i == 0)
    def _():
        out_ref[...] = jnp.zeros_like(out_ref)

    # cast to f32 inside the kernel (bf16 stays bf16 on the wire)
    x = logits_ref[...].astype(jnp.float32)            # (TILE_N, C)
    t = tgt_ref[...]                                    # (TILE_N, 1) int32

    # numerically stable logsumexp over classes
    m = jnp.max(x, axis=-1, keepdims=True)              # (TILE_N, 1)
    lse = m + jnp.log(jnp.sum(jnp.exp(x - m), axis=-1, keepdims=True))

    # gather target logit via compare + select + row-sum (no dynamic gather)
    col = jax.lax.broadcasted_iota(jnp.int32, x.shape, 1)
    tgt_logit = jnp.sum(jnp.where(col == t, x, 0.0), axis=-1, keepdims=True)

    ce = lse - tgt_logit                                 # per-sample CE
    pt = jnp.exp(tgt_logit - lse)                        # exp(-ce), no extra negate
    one_minus_pt = 1.0 - pt
    focal = ALPHA * (one_minus_pt * one_minus_pt) * ce   # gamma == 2

    # mask rows that are padding (when N was padded up to a multiple of TILE_N)
    row = i * tile_n + jax.lax.broadcasted_iota(jnp.int32, focal.shape, 0)
    focal = jnp.where(row < n_valid, focal, 0.0)

    out_ref[...] += jnp.sum(focal)

    # reduction='mean': divide by the true N on the last grid step
    @pl.when(i == pl.num_programs(0) - 1)
    def _():
        out_ref[...] = out_ref[...] * (1.0 / n_valid)


def focal_loss(logits, targets):
    """logits: (N, C) float32/bfloat16, targets: (N,) int class ids -> scalar f32."""
    n, c = logits.shape
    itemsize = jnp.dtype(logits.dtype).itemsize

    # Tile over N: multiple of 8, >= 512 rows when N allows it, but capped so a
    # single logits tile stays <= ~6 MiB (so 2x double-buffering fits scoped
    # VMEM comfortably on v5e's 16 MiB default and v7x's 64 MiB physical).
    tile_n = min(512, ((n + 7) // 8) * 8)
    tile_budget_bytes = 6 * 1024 * 1024
    while tile_n > 8 and tile_n * c * itemsize > tile_budget_bytes:
        tile_n //= 2
    tile_n = max(8, (tile_n // 8) * 8)

    num_tiles = pl.cdiv(n, tile_n)
    n_pad = num_tiles * tile_n

    tgt = targets.astype(jnp.int32).reshape(n, 1)
    logits_p = logits
    if n_pad != n:
        logits_p = jnp.pad(logits, ((0, n_pad - n), (0, 0)))
        tgt = jnp.pad(tgt, ((0, n_pad - n), (0, 0)))

    kernel = functools.partial(_focal_loss_kernel, n_valid=n, tile_n=tile_n)

    out = pl.pallas_call(
        kernel,
        out_shape=jax.ShapeDtypeStruct((1, 1), jnp.float32),
        grid=(num_tiles,),
        in_specs=[
            pl.BlockSpec((tile_n, c), lambda i: (i, 0)),
            pl.BlockSpec((tile_n, 1), lambda i: (i, 0)),
        ],
        # accumulator: same (0,0) block every step -> stays resident in VMEM
        out_specs=pl.BlockSpec((1, 1), lambda i: (0, 0)),
        compiler_params=pltpu.CompilerParams(
            dimension_semantics=("arbitrary",),   # reduction axis
            vmem_limit_bytes=32 * 1024 * 1024,
        ),
    )(logits_p, tgt)
    return out[0, 0]


def focal_loss_ref(logits, targets):
    """Pure-JAX reference (matches F.cross_entropy + focal weighting + mean)."""
    logits = logits.astype(jnp.float32)
    logp = jax.nn.log_softmax(logits, axis=-1)
    ce = -jnp.take_along_axis(logp, targets[:, None].astype(jnp.int32), axis=-1)[:, 0]
    pt = jnp.exp(-ce)
    return jnp.mean(ALPHA * (1.0 - pt) ** GAMMA * ce)


if __name__ == "__main__":
    key = jax.random.PRNGKey(0)

    # Test 1: small f32 batch, N a multiple of 8.
    k1, k2, key = jax.random.split(key, 3)
    N, C = 8, 16
    logits = jax.random.normal(k1, (N, C), dtype=jnp.float32)
    targets = jax.random.randint(k2, (N,), 0, C, dtype=jnp.int32)
    loss = focal_loss(logits, targets)
    jax.block_until_ready(loss)
    ref = focal_loss_ref(logits, targets)
    assert jnp.allclose(loss, ref, atol=1e-5, rtol=1e-5), (loss, ref)

    # Test 2: N not a multiple of the tile (exercises padding + masked mean).
    k1, k2, key = jax.random.split(key, 3)
    N2, C2 = 10, 16
    logits2 = jax.random.normal(k1, (N2, C2), dtype=jnp.float32)
    targets2 = jax.random.randint(k2, (N2,), 0, C2, dtype=jnp.int32)
    loss2 = focal_loss(logits2, targets2)
    jax.block_until_ready(loss2)
    ref2 = focal_loss_ref(logits2, targets2)
    assert jnp.allclose(loss2, ref2, atol=1e-5, rtol=1e-5), (loss2, ref2)

    # Test 3: bf16 logits end-to-end (half the HBM traffic; f32 math in-kernel).
    logits_bf16 = logits.astype(jnp.bfloat16)
    loss3 = focal_loss(logits_bf16, targets)
    jax.block_until_ready(loss3)
    ref3 = focal_loss_ref(logits_bf16.astype(jnp.float32), targets)
    assert jnp.allclose(loss3, ref3, atol=1e-4, rtol=1e-4), (loss3, ref3)

    print("KERNEL_OK")
</pallas_src>

<mosaic_0001>
module attributes {stable_mosaic.version = 11 : i64} {
  func.func @_focal_loss_kernel(%arg0: i32, %arg1: memref<8x16xf32, #tpu.memory_space<vmem>>, %arg2: memref<8x1xi32, #tpu.memory_space<vmem>>, %arg3: memref<1x1xf32, #tpu.memory_space<vmem>>) attributes {dimension_semantics = [#tpu.dimension_semantics<arbitrary>], iteration_bounds = array<i64: 1>, scalar_prefetch = 0 : i64, scratch_operands = 0 : i64, tpu.core_type = #tpu.core_type<tc>, window_params = [{transform_indices = @transform_0, window_bounds = array<i64: 8, 16>}, {transform_indices = @transform_1, window_bounds = array<i64: 8, 1>}, {pipeline_mode = #tpu.pipeline_mode<synchronous>, transform_indices = @transform_2, window_bounds = array<i64: 1, 1>}]} {
    %c0_i32 = arith.constant 0 : i32
    %0 = arith.cmpi eq, %arg0, %c0_i32 : i32
    %1 = arith.extui %0 : i1 to i32
    %c0_i32_0 = arith.constant 0 : i32
    %2 = arith.cmpi ne, %1, %c0_i32_0 : i32
    scf.if %2 {
      %cst_18 = arith.constant 0.000000e+00 : f32
      %49 = vector.broadcast %cst_18 : f32 to vector<1x1xf32>
      %c0_19 = arith.constant 0 : index
      %c0_20 = arith.constant 0 : index
      %50 = vector.load %arg3[%c0_19, %c0_20] : memref<1x1xf32, #tpu.memory_space<vmem>>, vector<1x1xf32>
      tpu.vector_store %arg3[%c0_19, %c0_20], %49 {strides = array<i32>} : memref<1x1xf32, #tpu.memory_space<vmem>>, vector<1x1xf32>,
    } else {
    }
    %c0 = arith.constant 0 : index
    %c0_1 = arith.constant 0 : index
    %3 = vector.load %arg1[%c0, %c0_1] : memref<8x16xf32, #tpu.memory_space<vmem>>, vector<8x16xf32>
    %c0_2 = arith.constant 0 : index
    %c0_3 = arith.constant 0 : index
    %4 = vector.load %arg2[%c0_2, %c0_3] : memref<8x1xi32, #tpu.memory_space<vmem>>, vector<8x1xi32>
    %cst = arith.constant dense<0xFF800000> : vector<8xf32>
    %5 = vector.multi_reduction <maximumf>, %3, %cst [1] : vector<8x16xf32> to vector<8xf32>
    %6 = vector.shape_cast %5 : vector<8xf32> to vector<8x1xf32>
    %7 = vector.broadcast %6 : vector<8x1xf32> to vector<8x16xf32>
    %8 = arith.subf %3, %7 : vector<8x16xf32>
    %9 = math.exp %8 : vector<8x16xf32>
    %cst_4 = arith.constant dense<0.000000e+00> : vector<8xf32>
    %10 = vector.multi_reduction <add>, %9, %cst_4 [1] : vector<8x16xf32> to vector<8xf32>
    %11 = vector.shape_cast %10 : vector<8xf32> to vector<8x1xf32>
    %12 = math.log %11 : vector<8x1xf32>
    %13 = arith.addf %6, %12 : vector<8x1xf32>
    %14 = tpu.iota {dimensions = array<i32: 1>} : vector<8x16xi32>
    %15 = vector.broadcast %4 : vector<8x1xi32> to vector<8x16xi32>
    %16 = arith.cmpi eq, %14, %15 : vector<8x16xi32>
    %cst_5 = arith.constant 0.000000e+00 : f32
    %17 = vector.broadcast %cst_5 : f32 to vector<8x16xf32>
    %18 = arith.select %16, %3, %17 : vector<8x16xi1>, vector<8x16xf32>
    %cst_6 = arith.constant dense<0.000000e+00> : vector<8xf32>
    %19 = vector.multi_reduction <add>, %18, %cst_6 [1] : vector<8x16xf32> to vector<8xf32>
    %20 = vector.shape_cast %19 : vector<8xf32> to vector<8x1xf32>
    %21 = arith.subf %13, %20 : vector<8x1xf32>
    %22 = arith.subf %20, %13 : vector<8x1xf32>
    %23 = math.exp %22 : vector<8x1xf32>
    %cst_7 = arith.constant 1.000000e+00 : f32
    %24 = vector.broadcast %cst_7 : f32 to vector<8x1xf32>
    %25 = arith.subf %24, %23 : vector<8x1xf32>
    %26 = arith.mulf %25, %25 : vector<8x1xf32>
    %cst_8 = arith.constant 1.000000e+00 : f32
    %27 = vector.broadcast %cst_8 : f32 to vector<8x1xf32>
    %28 = arith.mulf %27, %26 : vector<8x1xf32>
    %29 = arith.mulf %28, %21 : vector<8x1xf32>
    %c8_i32 = arith.constant 8 : i32
    %30 = arith.muli %arg0, %c8_i32 : i32
    %31 = tpu.iota {dimensions = array<i32: 0>} : vector<8x1xi32>
    %32 = vector.broadcast %30 : i32 to vector<8x1xi32>
    %33 = arith.addi %32, %31 : vector<8x1xi32>
    %c8_i32_9 = arith.constant 8 : i32
    %34 = vector.broadcast %c8_i32_9 : i32 to vector<8x1xi32>
    %35 = arith.cmpi slt, %33, %34 : vector<8x1xi32>
    %cst_10 = arith.constant 0.000000e+00 : f32
    %36 = vector.broadcast %cst_10 : f32 to vector<8x1xf32>
    %37 = arith.select %35, %29, %36 : vector<8x1xi1>, vector<8x1xf32>
    %c0_11 = arith.constant 0 : index
    %c0_12 = arith.constant 0 : index
    %38 = vector.load %arg3[%c0_11, %c0_12] : memref<1x1xf32, #tpu.memory_space<vmem>>, vector<1x1xf32>
    %39 = vector.shape_cast %37 : vector<8x1xf32> to vector<1x8x1xf32>
    %cst_13 = arith.constant dense<0.000000e+00> : vector<1xf32>
    %40 = vector.multi_reduction <add>, %39, %cst_13 [1, 2] : vector<1x8x1xf32> to vector<1xf32>
    %41 = vector.shape_cast %40 : vector<1xf32> to vector<1x1x1xf32>
    %42 = vector.extract %41[0, 0, 0] : f32 from vector<1x1x1xf32>
    %43 = vector.broadcast %42 : f32 to vector<1x1xf32>
    %44 = arith.addf %38, %43 : vector<1x1xf32>
    %c0_14 = arith.constant 0 : index
    %c0_15 = arith.constant 0 : index
    %45 = vector.load %arg3[%c0_14, %c0_15] : memref<1x1xf32, #tpu.memory_space<vmem>>, vector<1x1xf32>
    tpu.vector_store %arg3[%c0_14, %c0_15], %44 {strides = array<i32>} : memref<1x1xf32, #tpu.memory_space<vmem>>, vector<1x1xf32>,
    %c0_i32_16 = arith.constant 0 : i32
    %46 = arith.cmpi eq, %arg0, %c0_i32_16 : i32
    %47 = arith.extui %46 : i1 to i32
    %c0_i32_17 = arith.constant 0 : i32
    %48 = arith.cmpi ne, %47, %c0_i32_17 : i32
    scf.if %48 {
      %c0_18 = arith.constant 0 : index
      %c0_19 = arith.constant 0 : index
      %49 = vector.load %arg3[%c0_18, %c0_19] : memref<1x1xf32, #tpu.memory_space<vmem>>, vector<1x1xf32>
      %cst_20 = arith.constant 1.250000e-01 : f32
      %50 = vector.broadcast %cst_20 : f32 to vector<1x1xf32>
      %51 = arith.mulf %49, %50 : vector<1x1xf32>
      %c0_21 = arith.constant 0 : index
      %c0_22 = arith.constant 0 : index
      %52 = vector.load %arg3[%c0_21, %c0_22] : memref<1x1xf32, #tpu.memory_space<vmem>>, vector<1x1xf32>
      tpu.vector_store %arg3[%c0_21, %c0_22], %51 {strides = array<i32>} : memref<1x1xf32, #tpu.memory_space<vmem>>, vector<1x1xf32>,
    } else {
    }
    return
  }
  func.func @transform_0(%arg0: i32) -> (i32, i32) {
    %c0_i32 = arith.constant 0 : i32
    %c0_i32_0 = arith.constant 0 : i32
    return %arg0, %c0_i32 : i32, i32
  }
  func.func @transform_1(%arg0: i32) -> (i32, i32) {
    %c0_i32 = arith.constant 0 : i32
    %c0_i32_0 = arith.constant 0 : i32
    return %arg0, %c0_i32 : i32, i32
  }
  func.func @transform_2(%arg0: i32) -> (i32, i32) {
    %c0_i32 = arith.constant 0 : i32
    %c0_i32_0 = arith.constant 0 : i32
    %c0_i32_1 = arith.constant 0 : i32
    return %c0_i32, %c0_i32_0 : i32, i32
  }
}

</mosaic_0001>

<bundles_post_ra>
// kernel: tpu_custom_call.1
= control target key start
LH: loop header
LB: loop body
LE: loop exit
PB: predicated region body
PF: predicated region fallthrough
CT: control target
= control target key end

     0   :  { %vm20_vm0 = vcmask 130048   ;;  %s166_s0 = inlined_call_operand.vmem [shape: f32[8,16], index: 0, kind: input, shape index: {}]   ;;  %s167_s1 = inlined_call_operand.vmem [shape: s32[8,1], index: 1, kind: input, shape index: {}]   ;;  %s168_s2 = inlined_call_operand.hbm [shape: f32[1,1], index: 2, kind: output, shape index: {}]  }
   0x1   :  { %v18_v0 = vld [vmem:[%s166_s0] sm:$0xff] }
   0x2   :  { %7 = vsyncpa [#allocation3], 0  ;;  %v21_v1 = vsel %vm20_vm0, %v18_v0, -inf  ;;  %v133_v2 = vmov 0   ;;  %v19_v3 = vld [vmem:[%s167_s1] sm:$0xff]  ;;  %v33_v9 = vlaneseq  ;;  %vm58_vm2 = vcmask 7168  }
   0x3   :  { %100 = vset.pattern.permute.xlu0 %v133_v2  ;;  %vm16_vm3 = vcmask 0   ;;  %v134_v27 = vmov 0.0   ;;  %s135_s1 = smov [#allocation2]   ;;  %s86_s16 = sshll.u32 %s168_s2, 4  ;;  %s87_s16 = int_to_ptr.hbm [resolvable:$true] %s86_s16 }
   0x4   :  { %22 = vmax.xlane.f32.xlu0 %v21_v1  ;;  %v34_v10 = vand.u32 127, %v33_v9  ;;  %17 = vst.msk [vmem:[#allocation2] sm:$0x1] %vm16_vm3, %v134_v27  ;;  %s84_s13 = sshll.u32 %s135_s1, 4  ;;  %s85_s13 = int_to_ptr.vmem [resolvable:$true] %s84_s13 }
   0xb   :  { %v57_v35 = vld [vmem:[#allocation2] sm:$0x1] }
  0x18   :  { %36 = vperm.xlu0 %100, %v19_v3  }
  0x77   :  { %v23_v4 = vpop.xlane.xlu0 %22 }
  0x78   :  { %v24_v5 = vsub.f32 %v18_v0, %v23_v4 }
  0x7a   :  { %v25_v6 = vmul.f32 1.442695, %v24_v5 }
  0x7c   :  { %101 = vpow2.f32 %v25_v6 }
  0x82   :  { %v102_v7 = vpop.eup %101 }
  0x83   :  { %v27_v8 = vsel %vm20_vm0, %v102_v7, 0.0 }
  0x84   :  { %28 = vadd.xlane.f32.xlu1 %v27_v8 }
  0x8a   :  { %v37_v11 = vpop.permute.xlu0 %36 }
  0x8b   :  { %vm38_vm1 = vcmp.eq.s32.totalorder %v34_v10, %v37_v11 }
  0x8c   :  { %v39_v12 = vsel %vm38_vm1, %v18_v0, 0.0 }
  0x8d   :  { %v40_v13 = vsel %vm20_vm0, %v39_v12, 0.0 }
  0x8e   :  { %41 = vadd.xlane.f32.xlu1 %v40_v13 }
  0xf7   :  { %v29_v14 = vpop.xlane.xlu1 %28 }
  0xf8   :  { %103 = vlog2.f32 %v29_v14 }
  0xfe   :  { %v104_v15 = vpop.eup %103 }
  0xff   :  { %v31_v16 = vmul.f32 0.6931472, %v104_v15 }
 0x101   :  { %v32_v17 = vadd.f32 %v31_v16, %v23_v4  ;;  %v42_v18 = vpop.xlane.xlu1 %41 }
 0x103   :  { %v44_v19 = vsub.f32 %v42_v18, %v32_v17  ;;  %v43_v23 = vsub.f32 %v32_v17, %v42_v18 }
 0x105   :  { %v45_v20 = vmul.f32 1.442695, %v44_v19 }
 0x107   :  { %105 = vpow2.f32 %v45_v20 }
 0x10d   :  { %v106_v21 = vpop.eup %105 }
 0x10e   :  { %v47_v22 = vsub.f32 1.0, %v106_v21 }
 0x110   :  { %v48_v24 = vmul.f32 %v47_v22, %v47_v22 }
 0x112   :  { %v49_v25 = vmul.f32 %v48_v24, %v43_v23 }
 0x114   :  { %v59_v26 = vsel %vm58_vm2, %v49_v25, 0.0 }
 0x115   :  { %60 = vadd.xlane.f32.xlu2 %v59_v26 }
 0x188   :  { %v61_v28 = vpop.xlane.xlu2 %60 }
 0x189   :  { %v62_v29 = vrot.slane %v61_v28, 4 }
 0x18b   :  { %v63_v30 = vadd.f32 %v62_v29, %v61_v28 }
 0x18d   :  { %v64_v31 = vrot.slane %v63_v30, 2 }
 0x18f   :  { %v65_v32 = vadd.f32 %v64_v31, %v63_v30 }
 0x191   :  { %v66_v33 = vrot.slane %v65_v32, 1 }
 0x193   :  { %v67_v34 = vadd.f32 %v66_v33, %v65_v32 }
 0x195   :  { %95 = vpush %v67_v34 }
 0x1c6   :  { %s96_s0 = spop %95 }
 0x1c7   :  { %v69_v36 = vstv %s96_s0 }
 0x1c8   :  { %v70_v37 = vadd.f32 %v69_v36, %v57_v35 }
 0x1ca   :  { %72 = vst.msk [vmem:[#allocation2] sm:$0x1] %vm16_vm3, %v70_v37 }
 0x1d1   :  { %v76_v38 = vld [vmem:[#allocation2] sm:$0x1] }
 0x1d2   :  { %v77_v39 = vmul.f32 0.125, %v76_v38 }
 0x1d4   :  { %78 = vst.msk [vmem:[#allocation2] sm:$0x1] %vm16_vm3, %v77_v39 }
 0x1d5   :  { %89 = dma.vmem_to_hbm [thread:$0]  %s85_s13, 16, %s87_s16, [#allocation3]  }
 0x1d6   :  { %131 = dma.done.wait [#allocation3], 16  }
 0x1d7   :  { %132 = vsyncadd [#allocation3], 4294967280 }
 0x1d8   :  { %94 = vsyncpa [#allocation3], 1 }

</bundles_post_ra>
